<compile_context>
chip_gen: v6e
topology: v6e:2x2x1
jax: 0.10.0
libtpu: 0.0.40
codegen_flags: <defaults>
</compile_context>

<pallas_src>
import jax
import jax.numpy as jnp
from jax.experimental import pallas as pl
from jax.experimental.pallas import tpu as pltpu


def _scaling_kernel(a_ref, b_ref, x_ref, o_ref):
    # a_ref / b_ref: (R, 1) per-row constants (1/scale and -shift/scale).
    # x_ref / o_ref: (R, T) tiles of the flattened (N*C, H*W) array.
    o_ref[...] = (x_ref[...] * a_ref[...] + b_ref[...]).astype(o_ref.dtype)


def _choose_tile(full: int, unit: int, target: int) -> int:
    """Pick a block extent along one axis.

    Returns a multiple of `unit` that evenly divides `full` and is as large as
    possible without exceeding `target`. Falls back to `full` (a full-extent
    block always satisfies the TPU (8, 128) layout rule).
    """
    if full % unit != 0:
        return full
    target = max(unit, min(target, full))
    best = unit
    t = unit
    while t <= target:
        if full % t == 0:
            best = t
        t += unit
    return best


def scaling_layer(x: jax.Array, shift: jax.Array, scale: jax.Array,
                  *, target_block_bytes: int = 2 * 1024 * 1024) -> jax.Array:
    """Applies (x - shift) / scale with per-channel shift/scale.

    Args:
      x:     [N, C, H, W]  (NCHW, matching the PyTorch module)
      shift: per-channel shift, any shape with C elements
      scale: per-channel scale, any shape with C elements
    Returns:
      array of the same shape/dtype as x.
    """
    N, C, H, W = x.shape
    NC, HW = N * C, H * W

    shift = jnp.asarray(shift, jnp.float32).reshape(-1)
    scale = jnp.asarray(scale, jnp.float32).reshape(-1)

    # Fold subtract+divide into a single multiply-add.
    a = 1.0 / scale                 # (C,)
    b = -shift / scale              # (C,)
    # One constant per flattened row (row index = n*C + c).
    a_rows = jnp.tile(a, N).reshape(NC, 1)
    b_rows = jnp.tile(b, N).reshape(NC, 1)

    x2 = x.reshape(NC, HW)

    itemsize = jnp.dtype(x.dtype).itemsize
    target_elems = max(8 * 128, target_block_bytes // itemsize)

    # Lane-dense column tile first (multiple of 128, or the full HW extent),
    # then row tile to fill the remaining byte budget (multiple of 8 or full).
    T = _choose_tile(HW, 128, max(128, target_elems // 8))
    R = _choose_tile(NC, 8, max(8, target_elems // T))

    grid = (NC // R, HW // T)

    out2 = pl.pallas_call(
        _scaling_kernel,
        out_shape=jax.ShapeDtypeStruct((NC, HW), x.dtype),
        grid=grid,
        in_specs=[
            pl.BlockSpec((R, 1), lambda i, j: (i, 0)),   # a (1/scale) per row
            pl.BlockSpec((R, 1), lambda i, j: (i, 0)),   # b (-shift/scale) per row
            pl.BlockSpec((R, T), lambda i, j: (i, j)),   # x tile
        ],
        out_specs=pl.BlockSpec((R, T), lambda i, j: (i, j)),
        compiler_params=pltpu.CompilerParams(
            dimension_semantics=("parallel", "parallel")),
    )(a_rows, b_rows, x2)

    return out2.reshape(N, C, H, W)


if __name__ == "__main__":
    # Per-channel constants from the module's __init__ (registered buffers).
    shift = jnp.array([-0.030, -0.088, -0.188], dtype=jnp.float32)
    scale = jnp.array([0.458, 0.448, 0.450], dtype=jnp.float32)

    # Small NCHW RGB batch consistent with the module: (2, 3, 16, 16).
    key = jax.random.PRNGKey(0)
    x = jax.random.normal(key, (2, 3, 16, 16), dtype=jnp.float32)

    out = scaling_layer(x, shift, scale)
    out = jax.block_until_ready(out)

    # Reference (plain JAX broadcasting, mirrors the PyTorch forward).
    ref = (x - shift[None, :, None, None]) / scale[None, :, None, None]
    assert out.shape == x.shape and out.dtype == x.dtype
    assert jnp.allclose(out, ref, atol=1e-6, rtol=1e-6)

    print("KERNEL_OK")
</pallas_src>

<mosaic_0001>
module attributes {stable_mosaic.version = 11 : i64} {
  func.func @_scaling_kernel(%arg0: i32, %arg1: i32, %arg2: memref<6x1xf32, #tpu.memory_space<vmem>>, %arg3: memref<6x1xf32, #tpu.memory_space<vmem>>, %arg4: memref<6x256xf32, #tpu.memory_space<vmem>>, %arg5: memref<6x256xf32, #tpu.memory_space<vmem>>) attributes {dimension_semantics = [#tpu.dimension_semantics<parallel>, #tpu.dimension_semantics<parallel>], iteration_bounds = array<i64: 1, 1>, scalar_prefetch = 0 : i64, scratch_operands = 0 : i64, tpu.core_type = #tpu.core_type<tc>, window_params = [{transform_indices = @transform_0, window_bounds = array<i64: 6, 1>}, {transform_indices = @transform_1, window_bounds = array<i64: 6, 1>}, {transform_indices = @transform_2, window_bounds = array<i64: 6, 256>}, {transform_indices = @transform_3, window_bounds = array<i64: 6, 256>}]} {
    %c0 = arith.constant 0 : index
    %c0_0 = arith.constant 0 : index
    %0 = vector.load %arg4[%c0, %c0_0] : memref<6x256xf32, #tpu.memory_space<vmem>>, vector<6x256xf32>
    %c0_1 = arith.constant 0 : index
    %c0_2 = arith.constant 0 : index
    %1 = vector.load %arg2[%c0_1, %c0_2] : memref<6x1xf32, #tpu.memory_space<vmem>>, vector<6x1xf32>
    %2 = vector.broadcast %1 : vector<6x1xf32> to vector<6x256xf32>
    %3 = arith.mulf %0, %2 : vector<6x256xf32>
    %c0_3 = arith.constant 0 : index
    %c0_4 = arith.constant 0 : index
    %4 = vector.load %arg3[%c0_3, %c0_4] : memref<6x1xf32, #tpu.memory_space<vmem>>, vector<6x1xf32>
    %5 = vector.broadcast %4 : vector<6x1xf32> to vector<6x256xf32>
    %6 = arith.addf %3, %5 : vector<6x256xf32>
    %c0_5 = arith.constant 0 : index
    %c0_6 = arith.constant 0 : index
    %7 = vector.load %arg5[%c0_5, %c0_6] : memref<6x256xf32, #tpu.memory_space<vmem>>, vector<6x256xf32>
    tpu.vector_store %arg5[%c0_5, %c0_6], %6 {strides = array<i32>} : memref<6x256xf32, #tpu.memory_space<vmem>>, vector<6x256xf32>,
    return
  }
  func.func @transform_0(%arg0: i32, %arg1: i32) -> (i32, i32) {
    %c0_i32 = arith.constant 0 : i32
    %c0_i32_0 = arith.constant 0 : i32
    return %arg0, %c0_i32 : i32, i32
  }
  func.func @transform_1(%arg0: i32, %arg1: i32) -> (i32, i32) {
    %c0_i32 = arith.constant 0 : i32
    %c0_i32_0 = arith.constant 0 : i32
    return %arg0, %c0_i32 : i32, i32
  }
  func.func @transform_2(%arg0: i32, %arg1: i32) -> (i32, i32) {
    %c0_i32 = arith.constant 0 : i32
    return %arg0, %arg1 : i32, i32
  }
  func.func @transform_3(%arg0: i32, %arg1: i32) -> (i32, i32) {
    %c0_i32 = arith.constant 0 : i32
    return %arg0, %arg1 : i32, i32
  }
}

</mosaic_0001>

<bundles_post_ra>
// kernel: tpu_custom_call.1
= control target key start
LH: loop header
LB: loop body
LE: loop exit
PB: predicated region body
PF: predicated region fallthrough
CT: control target
= control target key end

     0   :  { %v74_v1 = vmov 0   ;;  %s111_s0 = inlined_call_operand.vmem [shape: f32[6,1], index: 0, kind: input, shape index: {}]   ;;  %s112_s1 = inlined_call_operand.vmem [shape: f32[6,1], index: 1, kind: input, shape index: {}]   ;;  %s113_s2 = inlined_call_operand.vmem [shape: f32[6,256], index: 2, kind: input, shape index: {}]   ;;  %s114_s3 = inlined_call_operand.hbm [shape: f32[6,256], index: 3, kind: output, shape index: {}]  }
   0x1   :  { %v17_v0 = vld [vmem:[%s111_s0] sm:$0x3f]  ;;  %51 = vset.pattern.permute.xlu0 %v74_v1 }
   0x2   :  { %8 = vsyncpa [#allocation3], 0  ;;  %20 = vperm.xlu0 %51, %v17_v0   ;;  %v25_v2 = vld [vmem:[%s112_s1] sm:$0x3f]  ;;  %v16_v5 = vld [vmem:[%s113_s2 + $0x8] sm:$0x3f] }
   0x3   :  { %v15_v4 = vld [vmem:[%s113_s2] sm:$0x3f]  ;;  %s75_s20 = smov [#allocation2]  }
   0x4   :  { %s41_s0 = sshll.u32 %s75_s20, 4  ;;  %s42_s0 = int_to_ptr.vmem [resolvable:$true] %s41_s0 }
   0x5   :  { %s52_s1 = scalar_lea.vmem %s42_s0, 256  ;;  %p57_p1 = scmp.lt.s32.totalorder %s42_s0, %s42_s0 }
   0x6   :  { %28 = vperm.xlu0 %51, %v25_v2   ;;  %p53_p0 = scmp.ne.s32.totalorder %s42_s0, %s52_s1  ;;  %p58_p2 = scmp.lt.s32.totalorder %s52_s1, %s52_s1 }
   0x8   :  { %p59_p3 = por %p58_p2, %p57_p1 }
   0xa   :  { %p60_p4 = pnand %p59_p3, %p53_p0 }
  0x7d   :  { %v21_v3 = vpop.permute.xlu0 %20 }
  0x7e   :  { %v23_v6 = vmul.f32 %v21_v3, %v15_v4  ;;  %v24_v7 = vmul.f32 %v21_v3, %v16_v5 }
  0x81   :  { %v29_v8 = vpop.permute.xlu0 %28 }
  0x82   :  { %v31_v9 = vadd.f32 %v29_v8, %v23_v6  ;;  %v32_v10 = vadd.f32 %v29_v8, %v24_v7 }
  0x84   :  { %33 = vst [vmem:[#allocation2] sm:$0x3f] %v31_v9  ;;  %34 = vst [vmem:[#allocation2 + $0x8] sm:$0x3f] %v32_v10 }
  0x85   :  { %63 = shalt.err (!%p60_p4)
}
  0x86   :  { %44 = dma.vmem_to_hbm [thread:$0]  %s42_s0, 256, %s114_s3, [#allocation3]  }
  0x87   :  { %72 = dma.done.wait [#allocation3], 256  }
  0x88   :  { %73 = vsyncadd [#allocation3], 4294967040 }
  0x89   :  { %48 = vsyncpa [#allocation3], 1 }

</bundles_post_ra>
